<compile_context>
chip_gen: v6e
topology: v6e:2x2x1
jax: 0.10.0
libtpu: 0.0.40
codegen_flags: <defaults>
</compile_context>

<pallas_src>
import jax
import jax.numpy as jnp
from jax import lax
from jax.experimental import pallas as pl
from jax.experimental.pallas import tpu as pltpu

_EPS = 1e-12  # F.normalize default eps


def _rmsnorm_kernel(x_ref, g_ref, o_ref):
    # x_ref: (Nb, C, T) block (channels on sublanes, spatial on lanes)
    # g_ref: (1, C, 1) pre-scaled gain (g * sqrt(C))
    x = x_ref[...].astype(jnp.float32)
    g = g_ref[...].astype(jnp.float32)
    sq_sum = jnp.sum(x * x, axis=1, keepdims=True)          # (Nb, 1, T)  XLU
    # 1 / max(||x||, eps) == rsqrt(max(||x||^2, eps^2)); rsqrt runs on the EUP.
    inv = lax.rsqrt(jnp.maximum(sq_sum, _EPS * _EPS))        # (Nb, 1, T)
    o_ref[...] = (x * inv * g).astype(o_ref.dtype)


def _vmem_capacity_bytes():
    try:
        cap = getattr(pltpu.get_tpu_info(), "vmem_capacity_bytes", None)
        if cap:
            return int(cap)
    except Exception:
        pass
    return 64 << 20  # conservative (v7x-sized) fallback


def _largest_divisor_leq(n, cap):
    cap = max(1, min(n, cap))
    for d in range(cap, 0, -1):
        if n % d == 0:
            return d
    return 1


def _plan_tiles(N, C, HW, itemsize, vmem_cap):
    """Pick (Nb, tile_hw) for blocks of shape (Nb, C, tile_hw)."""
    # Live set per grid step: 2 in + 2 out blocks in x.dtype (double-buffered)
    # plus ~2 f32 block-sized intermediates inside the kernel body.
    live_bytes_per_col = C * (4 * itemsize + 2 * 4)
    blk_bytes_per_col = C * itemsize

    # Per-generation budget: ~1/4 of physical VMEM, clamped to [8, 32] MiB.
    # (v5e/v6e -> 32 MiB, v7x (64 MiB phys) -> 16 MiB.)
    budget = min(max(vmem_cap // 4, 8 << 20), 32 << 20)
    per_block_target = 2 << 20  # ~2 MiB per input block amortizes step overhead

    max_cols = max(128, min(budget // live_bytes_per_col,
                            per_block_target // blk_bytes_per_col))

    if HW <= max_cols:
        # Full spatial extent per block: a block dim equal to the full array
        # dim is exempt from the 128-lane rule, so no padding is ever needed.
        tile_hw = HW
        nb = _largest_divisor_leq(N, max(1, max_cols // HW))
    else:
        # 128-multiple tile; a ragged final block is masked on store by Pallas.
        tile_hw = max(128, (max_cols // 128) * 128)
        nb = 1

    # Keep >= 2 (target ~8) parallel grid steps so both v7x TensorCores get
    # work; shrink Nb first, then split tile_hw while it stays a legal
    # (128-multiple) block width.
    def n_steps(nb_, t_):
        return pl.cdiv(N, nb_) * pl.cdiv(HW, t_)

    while n_steps(nb, tile_hw) < 8 and nb > 1:
        nb = _largest_divisor_leq(N, nb - 1)
    while n_steps(nb, tile_hw) < 8 and tile_hw % 256 == 0:
        tile_hw //= 2

    return nb, tile_hw


def rmsnorm_nchw(x, g):
    """x: (N, C, H, W), g: (1, C, 1, 1). Returns (N, C, H, W)."""
    N, C, H, W = x.shape
    HW = H * W

    x3 = x.reshape(N, C, HW)                                # pure view, no copy
    g3 = g.reshape(1, C, 1).astype(jnp.float32) * (float(C) ** 0.5)

    itemsize = jnp.dtype(x.dtype).itemsize
    vmem_cap = _vmem_capacity_bytes()
    nb, tile_hw = _plan_tiles(N, C, HW, itemsize, vmem_cap)
    grid = (pl.cdiv(N, nb), pl.cdiv(HW, tile_hw))

    out3 = pl.pallas_call(
        _rmsnorm_kernel,
        out_shape=jax.ShapeDtypeStruct((N, C, HW), x.dtype),
        grid_spec=pltpu.PrefetchScalarGridSpec(
            num_scalar_prefetch=0,
            grid=grid,
            in_specs=[
                pl.BlockSpec((nb, C, tile_hw), lambda n, t: (n, 0, t)),
                pl.BlockSpec((1, C, 1), lambda n, t: (0, 0, 0)),
            ],
            out_specs=pl.BlockSpec((nb, C, tile_hw), lambda n, t: (n, 0, t)),
        ),
        compiler_params=pltpu.CompilerParams(
            dimension_semantics=("parallel", "parallel"),
            # Raise the scoped limit above the 16/32 MiB defaults, with
            # headroom below physical VMEM on every generation.
            vmem_limit_bytes=int(min(vmem_cap * 3 // 4, 96 << 20)),
        ),
    )(x3, g3)

    return out3.reshape(N, C, H, W)


def rmsnorm_ref(x, g):
    """Pure-JAX reference mirroring F.normalize(x, dim=1) * g * sqrt(C)."""
    C = x.shape[1]
    norm = jnp.sqrt(jnp.sum(x.astype(jnp.float32) ** 2, axis=1, keepdims=True))
    denom = jnp.maximum(norm, _EPS)
    return (x / denom) * g * (C ** 0.5)


if __name__ == "__main__":
    key = jax.random.PRNGKey(0)
    N, C, H, W = 2, 4, 16, 16
    x = jax.random.normal(key, (N, C, H, W), dtype=jnp.float32)
    # Deterministic parameter init, matching nn.Parameter(torch.ones(1, dim, 1, 1))
    g = jnp.ones((1, C, 1, 1), dtype=jnp.float32)

    out = jax.block_until_ready(rmsnorm_nchw(x, g))
    ref = rmsnorm_ref(x, g)
    assert out.shape == (N, C, H, W)
    assert jnp.allclose(out, ref, atol=1e-5, rtol=1e-5), "mismatch vs reference"

    # Second case: H*W not a multiple of 128 (exercises the full-last-dim
    # block path — no pad, no slice).
    key2 = jax.random.PRNGKey(1)
    x2 = jax.random.normal(key2, (2, 4, 10, 10), dtype=jnp.float32)
    out2 = jax.block_until_ready(rmsnorm_nchw(x2, g))
    ref2 = rmsnorm_ref(x2, g)
    assert jnp.allclose(out2, ref2, atol=1e-5, rtol=1e-5), "mismatch (ragged HW)"

    print("KERNEL_OK")
</pallas_src>

<mosaic_0001>
module attributes {stable_mosaic.version = 11 : i64} {
  func.func @_rmsnorm_kernel(%arg0: i32, %arg1: i32, %arg2: memref<1x4x128xf32, #tpu.memory_space<vmem>>, %arg3: memref<1x4x1xf32, #tpu.memory_space<vmem>>, %arg4: memref<1x4x128xf32, #tpu.memory_space<vmem>>) attributes {dimension_semantics = [#tpu.dimension_semantics<parallel>, #tpu.dimension_semantics<parallel>], iteration_bounds = array<i64: 2, 2>, scalar_prefetch = 0 : i64, scratch_operands = 0 : i64, tpu.core_type = #tpu.core_type<tc>, window_params = [{transform_indices = @transform_0, window_bounds = array<i64: 1, 4, 128>}, {pipeline_mode = #tpu.pipeline_mode<synchronous>, transform_indices = @transform_1, window_bounds = array<i64: 1, 4, 1>}, {transform_indices = @transform_2, window_bounds = array<i64: 1, 4, 128>}]} {
    %c0 = arith.constant 0 : index
    %c0_0 = arith.constant 0 : index
    %c0_1 = arith.constant 0 : index
    %0 = vector.load %arg2[%c0, %c0_0, %c0_1] : memref<1x4x128xf32, #tpu.memory_space<vmem>>, vector<1x4x128xf32>
    %c0_2 = arith.constant 0 : index
    %c0_3 = arith.constant 0 : index
    %c0_4 = arith.constant 0 : index
    %1 = vector.load %arg3[%c0_2, %c0_3, %c0_4] : memref<1x4x1xf32, #tpu.memory_space<vmem>>, vector<1x4x1xf32>
    %2 = arith.mulf %0, %0 : vector<1x4x128xf32>
    %cst = arith.constant dense<0.000000e+00> : vector<1x128xf32>
    %3 = vector.multi_reduction <add>, %2, %cst [1] : vector<1x4x128xf32> to vector<1x128xf32>
    %4 = vector.shape_cast %3 : vector<1x128xf32> to vector<1x1x128xf32>
    %cst_5 = arith.constant 1.000000e-24 : f32
    %5 = vector.broadcast %cst_5 : f32 to vector<1x1x128xf32>
    %6 = arith.maximumf %4, %5 : vector<1x1x128xf32>
    %7 = math.rsqrt %6 : vector<1x1x128xf32>
    %8 = vector.broadcast %7 : vector<1x1x128xf32> to vector<1x4x128xf32>
    %9 = arith.mulf %0, %8 : vector<1x4x128xf32>
    %10 = vector.broadcast %1 : vector<1x4x1xf32> to vector<1x4x128xf32>
    %11 = arith.mulf %9, %10 : vector<1x4x128xf32>
    %c0_6 = arith.constant 0 : index
    %c0_7 = arith.constant 0 : index
    %c0_8 = arith.constant 0 : index
    %12 = vector.load %arg4[%c0_6, %c0_7, %c0_8] : memref<1x4x128xf32, #tpu.memory_space<vmem>>, vector<1x4x128xf32>
    tpu.vector_store %arg4[%c0_6, %c0_7, %c0_8], %11 {strides = array<i32>} : memref<1x4x128xf32, #tpu.memory_space<vmem>>, vector<1x4x128xf32>,
    return
  }
  func.func @transform_0(%arg0: i32, %arg1: i32) -> (i32, i32, i32) {
    %c0_i32 = arith.constant 0 : i32
    %c0_i32_0 = arith.constant 0 : i32
    return %arg0, %c0_i32, %arg1 : i32, i32, i32
  }
  func.func @transform_1(%arg0: i32, %arg1: i32) -> (i32, i32, i32) {
    %c0_i32 = arith.constant 0 : i32
    %c0_i32_0 = arith.constant 0 : i32
    %c0_i32_1 = arith.constant 0 : i32
    %c0_i32_2 = arith.constant 0 : i32
    return %c0_i32, %c0_i32_0, %c0_i32_1 : i32, i32, i32
  }
  func.func @transform_2(%arg0: i32, %arg1: i32) -> (i32, i32, i32) {
    %c0_i32 = arith.constant 0 : i32
    %c0_i32_0 = arith.constant 0 : i32
    return %arg0, %c0_i32, %arg1 : i32, i32, i32
  }
}

</mosaic_0001>

<bundles_post_ra>
// kernel: tpu_custom_call.1
= control target key start
LH: loop header
LB: loop body
LE: loop exit
PB: predicated region body
PF: predicated region fallthrough
CT: control target
= control target key end

     0   :  { %7 = vsyncpa [#allocation3], 0  ;;  %s699_s0 = inlined_call_operand.hbm [shape: f32[2,4,256], index: 0, kind: input, shape index: {}]   ;;  %s700_s1 = inlined_call_operand.vmem [shape: f32[1,4,1], index: 1, kind: input, shape index: {}]   ;;  %s701_s2 = inlined_call_operand.hbm [shape: f32[2,4,256], index: 2, kind: output, shape index: {}]  }
   0x1   :  { %9 = vsyncpa [#allocation3 + $0x1], 0 }
   0x2   :  { %10 = vsyncpa [#allocation4], 0 }
   0x3   :  { %12 = vsyncpa [#allocation4 + $0x1], 0  ;;  %s540_s9 = smov 0   ;;  %s542_s10 = smov 0  }
   0x4   :  { %s544_s11 = smov 0   ;;  %s546_s12 = smov 0  }
   0x5   :  { %s548_s13 = smov 0   ;;  %s550_s14 = smov 0  }
   0x6   :  { %s552_s15 = smov 0   ;;  %s554_s16 = smov 0  }
   0x7 LB: > { %s299_s17 = sadd.s32 4294967295, %s520_s16   ;;  %s300_s18 = sadd.s32 4294967294, %s520_s16   ;;  %s520_s16 = sphi %s554_s16, %s18_s16   ;;  %s516_s15 = sphi %s552_s15, %s714_s15   ;;  %s512_s14 = sphi %s550_s14, %s713_s14   ;;  %s508_s13 = sphi %s548_s13, %s712_s13   ;;  %s504_s12 = sphi %s546_s12, %s711_s12   ;;  %s500_s11 = sphi %s544_s11, %s710_s11   ;;  %s496_s10 = sphi %s542_s10, %s709_s10   ;;  %s492_s9 = sphi %s540_s9, %s708_s9  }
   0x8   : > { %s27_s19 = sadd.s32 1, %s512_s14  ;;  %s30_s20 = sadd.s32 1, %s516_s15 }
   0x9   : > { %p28_p0 = scmp.ge.s32.totalorder %s27_s19, 2  ;;  %s39_s21 = sadd.s32 1, %s500_s11 }
   0xa   : > { %p46_p1 = scmp.ne.s32.totalorder %s500_s11, %s496_s10  ;;  %p47_p2 = scmp.eq.s32.totalorder %s520_s16, 0 }
   0xb   : > { %s716_s19 = smov (%p28_p0, %s27_s19), 0  ;;  %s718_s20 = smov (!%p28_p0, %s30_s20), %s516_s15 }
   0xc   : > { %s35_s22 = ssub.s32 %s512_s14, %s716_s19  ;;  %p593_p3 = por %p47_p2, %p46_p1 }
   0xd   : > { %p32_p4 = scmp.ge.s32.totalorder %s718_s20, 2  ;;  %p52_p5 = scmp.ne.s32.totalorder %s496_s10, %s492_s9 }
   0xe   : > { %p53_p6 = scmp.eq.s32.totalorder %s299_s17, 0  ;;  %p99_p7 = scmp.eq.s32.totalorder %s299_s17, 3 }
   0xf   : > { %s720_s20 = smov (%p32_p4, %s718_s20), 0  ;;  %p105_p10 = scmp.eq.s32.totalorder %s300_s18, 3 }
  0x10   : > { %p601_p8 = por %p53_p6, %p52_p5  ;;  %p605_p9 = por %p99_p7, %p46_p1 }
  0x11   : > { %s34_s26 = ssub.s32 %s516_s15, %s720_s20  ;;  %p611_p12 = por %p105_p10, %p52_p5 }
  0x12   : > { %s36_s27 = sor.u32 %s35_s22, %s34_s26  ;;  %p326_p13 = scmp.lt.s32.totalorder %s520_s16, 4 }
  0x13   : > { %p37_p11 = scmp.eq.s32.totalorder %s36_s27, 0  ;;  %s128_s29 = sand.u32 1, %s500_s11  }
  0x14   : > { %s705_s28 = scalar_select %p611_p12, 1, 0 }
  0x15   : > { %s618_s30 = scalar_select %p37_p11, %s500_s11, %s39_s21  }
  0x16   : > { %s303_s3 = sshll.u32 %s128_s29, 2  ;;  %s304_s4 = sshll.u32 %s516_s15, 1 }
  0x17   : > { %s137_s5 = sadd.s32 %s512_s14, %s304_s4  ;;  %s132_s6 = scalar_lea.vmem [#allocation2], %s303_s3 }
  0x18   : > { %s141_s7 = sshll.u32 %s132_s6, 4  ;;  %s305_s8 = sshll.u32 %s137_s5, 6  ;;  %s142_s7 = int_to_ptr.vmem [resolvable:$true] %s141_s7 }
  0x19   : > { %s139_s22 = scalar_lea.hbm %s699_s0, %s305_s8  ;;  %p627_p0 = pnand %p326_p13, %p593_p3 }
  0x1a   : > { %p306_p1 = scmp.ge.s32.totalorder %s520_s16, 1  ;;  %p146_p2 = scmp.lt.s32.totalorder %s520_s16, 5 }
  0x1b   : > { %s129_s21 = scalar_lea.sflag [#allocation3], %s128_s29  ;;  %p398_p4 = pneg %p627_p0 }
  0x1c   : > { %s409_s27 = scalar_lea.vmem %s142_s7, 64  ;;  %s522_s3 = smov [#allocation2]  }
  0x1d   : > { %p410_p5 = scmp.ne.s32.totalorder %s142_s7, %s409_s27  ;;  %s414_s4 = sshll.u32 %s522_s3, 4  ;;  %s415_s4 = int_to_ptr.vmem [resolvable:$false] %s414_s4 }
  0x1e   : > { %s416_s5 = scalar_lea.vmem %s415_s4, 128  ;;  %p417_p10 = scmp.lt.s32.totalorder %s142_s7, %s415_s4 }
  0x1f   : > { %p412_p6 = pnand %p410_p5, %p398_p4  ;;  %p418_p11 = scmp.lt.s32.totalorder %s416_s5, %s409_s27 }
  0x21   : > { %p413_p7 = pneg %p412_p6  ;;  %p419_p3 = por %p418_p11, %p417_p10 }
  0x23   : > { %p420_p13 = pnand %p419_p3, %p413_p7 }
  0x25   : > { %423 = shalt.err (!%p420_p13)
}
  0x26   : > { %321 = dma.hbm_to_vmem [thread:$0]  (!%p627_p0), %s139_s22, 64, %s142_s7, %s129_s21  }
  0x27   : > { %p147_p12 = pnand %p306_p1, %p146_p2 }
  0x28   : > { %s642_s23 = sand.u32 (!%p147_p12), 1, %s496_s10  }
  0x29   : > { %150 = sbr.rel (%p147_p12) target bundleno = 188 (0xbc), region = 28  ;;  %s307_s29 = sshll.u32 (!%p147_p12), %s642_s23, 2 }
  0x2a   : > { %s153_s6 = scalar_lea.sflag (!%p147_p12), [#allocation3], %s642_s23  ;;  %s156_s8 = scalar_lea.vmem (!%p147_p12), [#allocation2], %s307_s29 }
  0x2e   : > { %483 = dma.done.wait (%p601_p8), %s153_s6, 64  }
  0x2f   : > { %485 = vsyncadd (%p601_p8), %s153_s6, 4294967232  ;;  %v523_v0 = vmov 0   ;;  %v178_v1 = vld [vmem:[%s700_s1] sm:$0xf]  ;;  %vm180_vm0 = vcmask 1043456   ;;  %s310_s24 = sshll.u32 %s508_s13, 1 }
  0x30   : > { %393 = vset.pattern.permute.xlu0 %v523_v0  ;;  %v177_v2 = vld [vmem:[%s156_s8] sm:$0xf]  ;;  %s210_s18 = sadd.s32 %s504_s12, %s310_s24  ;;  %s176_s26 = scalar_lea.vmem [#allocation5], %s307_s29 }
  0x31   : > { %193 = vperm.xlu0 %393, %v178_v1   ;;  %v179_v3 = vmul.f32 %v177_v2, %v177_v2  ;;  %s311_s22 = sshll.u32 %s210_s18, 6  ;;  %s214_s21 = sshll.u32 %s176_s26, 4  ;;  %s215_s21 = int_to_ptr.vmem [resolvable:$true] %s214_s21 }
  0x32   : > { %s212_s4 = scalar_lea.hbm %s701_s2, %s311_s22  ;;  %s199_s5 = scalar_lea.sflag [#allocation4], %s642_s23 }
  0x33   : > { %v181_v4 = vsel %vm180_vm0, %v179_v3, 0.0  ;;  %s424_s6 = scalar_lea.vmem %s215_s21, 64  ;;  %s524_s13 = smov [#allocation5]  }
  0x34   : > { %v182_v5 = vrot.slane %v181_v4, 4  ;;  %p425_p8 = scmp.ne.s32.totalorder %s215_s21, %s424_s6  ;;  %s428_s12 = sshll.u32 %s524_s13, 4  ;;  %s429_s12 = int_to_ptr.vmem [resolvable:$false] %s428_s12 }
  0x35   : > { %s430_s8 = scalar_lea.vmem %s429_s12, 128  ;;  %p431_p1 = scmp.lt.s32.totalorder %s215_s21, %s429_s12 }
  0x36   : > { %v183_v6 = vadd.f32 %v182_v5, %v181_v4  ;;  %p426_p12 = pnand %p425_p8, %p605_p9  ;;  %p432_p2 = scmp.lt.s32.totalorder %s430_s8, %s424_s6 }
  0x38   : > { %v184_v7 = vrot.slane %v183_v6, 2  ;;  %p427_p0 = pneg %p426_p12  ;;  %p433_p4 = por %p432_p2, %p431_p1 }
  0x3a   : > { %v185_v8 = vadd.f32 %v184_v7, %v183_v6  ;;  %p434_p5 = pnand %p433_p4, %p427_p0 }
  0x3c   : > { %v186_v9 = vrot.slane %v185_v8, 1 }
  0x3e   : > { %v187_v10 = vadd.f32 %v186_v9, %v185_v8 }
  0x40   : > { %v188_v11 = vmax.f32 %v187_v10, 1e-24 }
  0x42   : > { %394 = vrsqrt.f32 %v188_v11 }
  0x4f   : > { %v395_v12 = vpop.eup %394 }
  0x50   : > { %v190_v13 = vmul.f32 %v395_v12, %v177_v2 }
  0xac   : > { %v194_v14 = vpop.permute.xlu0 %193 }
  0xad   : > { %v196_v15 = vmul.f32 %v194_v14, %v190_v13 }
  0xaf   : > { %197 = vst [vmem:[%s176_s26] sm:$0xf] %v196_v15 }
  0xb0   : > { %437 = shalt.err (!%p434_p5)
}
  0xb1   : > { %s438_s29 = scalar_lea.hbm %s212_s4, 64  ;;  %s442_s17 = scalar_lea.hbm %s701_s2, 256 }
  0xb2   : > { %p439_p6 = scmp.ne.s32.totalorder %s212_s4, %s438_s29  ;;  %p443_p11 = scmp.lt.s32.totalorder %s212_s4, %s701_s2 }
  0xb3   : > { %p444_p3 = scmp.lt.s32.totalorder %s442_s17, %s438_s29 }
  0xb4   : > { %p440_p7 = pnand %p439_p6, %p605_p9 }
  0xb5   : > { %p445_p13 = por %p444_p3, %p443_p11 }
  0xb6   : > { %p441_p10 = pneg %p440_p7 }
  0xb8   : > { %p446_p8 = pnand %p445_p13, %p441_p10 }
  0xba   : > { %449 = shalt.err (!%p446_p8)
}
  0xbb   : > { %316 = dma.vmem_to_hbm [thread:$0]  (%p605_p9), %s215_s21, 64, %s212_s4, %s199_s5  }
  0xbc PF: > { %p327_p12 = scmp.ge.s32.totalorder %s520_s16, 2  ;;  %s226_s22 = sand.u32 1, %s492_s9  }
  0xbd   : > { %p707_p0 = scmp.ne.s32.totalorder %s705_s28, 0  ;;  %s227_s26 = scalar_lea.sflag [#allocation4], %s226_s22 }
  0xbf   : > { %p323_p1 = pnand %p327_p12, %p707_p0 }
  0xc1   : > { %p324_p2 = pneg %p323_p1 }
  0xc3   : > { %487 = dma.done.wait (%p324_p2), %s227_s26, 64  }
  0xc4   : > { %489 = vsyncadd (%p324_p2), %s227_s26, 4294967232  ;;  %s18_s16 = sadd.s32 1, %s520_s16   ;;  %s708_s9 = smov %s496_s10 }
  0xc5   : > { %p15_p4 = scmp.ge.s32.totalorder %s18_s16, 6   ;;  %s709_s10 = smov %s500_s11 }
  0xc6   : > { %s710_s11 = smov %s618_s30  ;;  %s711_s12 = smov %s512_s14 }
  0xc7   : > { %s712_s13 = smov %s516_s15  ;;  %s713_s14 = smov %s716_s19 }
  0xc8   : > { %s714_s15 = smov %s720_s20  ;;  %17 = sbr.rel (!%p15_p4) target bundleno = 7 (0x7), region = 73 }
  0xcd   :  { %232 = vsyncpa [#allocation3], 1 }
  0xce   :  { %234 = vsyncpa [#allocation3 + $0x1], 1 }
  0xcf   :  { %235 = vsyncpa [#allocation4], 1 }
  0xd0   :  { %237 = vsyncpa [#allocation4 + $0x1], 1 }

</bundles_post_ra>
